<compile_context>
chip_gen: v7x
topology: tpu7x:2x2x1
jax: 0.10.0
libtpu: 0.0.40
codegen_flags: <defaults>
</compile_context>

<pallas_src>
import functools

import jax
import jax.numpy as jnp
from jax.experimental import pallas as pl
from jax.experimental.pallas import tpu as pltpu


def _lm_head_kernel(h_ref, w_ref, o_ref, acc_ref):
    """One (tm, tv) logits tile; K (hidden) is the innermost grid axis.

    h_ref:   (tm, tk) bf16 pre-shifted hidden rows ((B, S) collapsed into M)
    w_ref:   (tk, tv) bf16 vocab tile of the LM-head weight
    o_ref:   (tm, tv) out_dtype logits tile (already shifted: the hidden rows were
             shifted before the position-wise projection, which commutes with it)
    acc_ref: (tm, tv) f32 VMEM accumulator, live across the K axis
    """
    k = pl.program_id(2)

    @pl.when(k == 0)
    def _():
        acc_ref[...] = jnp.zeros_like(acc_ref)

    acc_ref[...] += jnp.dot(
        h_ref[...], w_ref[...], preferred_element_type=jnp.float32
    )

    @pl.when(k == pl.num_programs(2) - 1)
    def _():
        o_ref[...] = acc_ref[...].astype(o_ref.dtype)


def _vmem_budget_bytes():
    """~75% of physical VMEM: 96 MiB on v5e/v6e (128 MiB), 48 MiB on v7x (64 MiB).

    Always >= 32 MiB so v5e never silently falls back to its 16 MiB scoped default
    (which would force single-buffering); always leaves headroom on v7x for compiler
    scratch / semaphores / double-buffer metadata.
    """
    try:
        cap = pltpu.get_tpu_info().vmem_capacity_bytes
    except Exception:  # query unavailable (e.g. interpret mode) -> assume 128 MiB
        cap = 128 * 1024 * 1024
    return int(min(max(32 * 1024 * 1024, 0.75 * cap), 112 * 1024 * 1024))


def lm_head_pallas(h, w_out, *, tm=512, tv=None, tk=None, out_dtype=jnp.float32):
    """h: (M, H) bf16, w_out: (H, V) bf16 -> logits (M, V) out_dtype.

    Grid is (V//tv, M//tm, H//tk) with the vocab axis OUTER (each weight tile is
    DMA'd from HBM once and reused across every M tile — the weight stream dominates
    HBM traffic for an LM head) and the reduction (K) axis innermost with a f32 VMEM
    accumulator. Inputs must already be in the compute dtype (bf16): no per-call cast.
    """
    M, H = h.shape
    Hw, V = w_out.shape
    assert H == Hw
    assert h.dtype == w_out.dtype, "store params in the compute dtype once at init"

    vmem_budget = _vmem_budget_bytes()

    if tv is None:
        # v7x (<=48 MiB budget) already clears its roofline ridge at tv=1024 and the
        # tv=2048 weight double-buffer would not fit; v5e/v6e want tv=2048.
        tv = 2048 if vmem_budget > 64 * 1024 * 1024 else 1024
    tv = min(tv, V)
    assert V % tv == 0, "tv must divide V"

    if tk is None:
        tk = min(H, 4096)  # K-tile only very large hidden sizes
    if H % tk != 0:
        tk = H  # odd hidden sizes: single K step (kernel still correct)

    # Pad M up to a multiple of tm rather than shrinking the tile for ragged M.
    tm = min(tm, M)
    m_pad = pl.cdiv(M, tm) * tm
    if m_pad != M:
        h = jnp.pad(h, ((0, m_pad - M), (0, 0)))

    bc = jnp.dtype(h.dtype).itemsize
    bo = jnp.dtype(out_dtype).itemsize
    # double-buffered input/output tiles + f32 accumulator + slack
    vmem_needed = (
        2 * ((tm * tk + tk * tv) * bc + tm * tv * bo) + tm * tv * 4 + (1 << 20)
    )
    vmem_limit = int(min(max(vmem_needed, 32 * 1024 * 1024), vmem_budget))

    grid = (V // tv, m_pad // tm, H // tk)
    out = pl.pallas_call(
        _lm_head_kernel,
        out_shape=jax.ShapeDtypeStruct((m_pad, V), out_dtype),
        grid_spec=pltpu.PrefetchScalarGridSpec(
            num_scalar_prefetch=0,
            grid=grid,
            in_specs=[
                pl.BlockSpec((tm, tk), lambda v, m, k: (m, k)),
                pl.BlockSpec((tk, tv), lambda v, m, k: (k, v)),
            ],
            out_specs=pl.BlockSpec((tm, tv), lambda v, m, k: (m, v)),
            scratch_shapes=[pltpu.VMEM((tm, tv), jnp.float32)],
        ),
        compiler_params=pltpu.CompilerParams(
            # Only the vocab (leading) axis is "parallel": a v7x megacore split lands
            # on vocab, so the HxV weight is read from HBM exactly once in total.
            # K is a reduction (output revisited) -> must be "arbitrary" and last.
            dimension_semantics=("parallel", "arbitrary", "arbitrary"),
            vmem_limit_bytes=vmem_limit,
        ),
    )(h, w_out)
    return out[:M] if m_pad != M else out


def shifted_logits_wrapper_forward(input_ids, params, attention_mask=None):
    """ShiftedLogitsWrapper.forward: run the inner model, then shift the logits left
    by one position (torch.cat([logits[:, :1], logits[:, :-1]], dim=1)).

    The synthetic inner "model" is an embedding lookup followed by an LM-head
    projection. Both are strictly position-wise, so applying the shift to the token
    ids BEFORE the gather is bitwise equivalent to shifting the logits AFTER the
    matmul — and it touches only B*S int32s instead of an extra (B, S, H) copy plus
    a (B, S, V) copy in HBM.
    NOTE: this hoist is only valid while the inner model has no cross-position ops
    (attention/conv) — if one is added, the shift must move back to the logits.
    """
    # TODO(synk): attention_mask accepted for API parity but unused (this synthetic
    # inner model has no attention).
    del attention_mask
    shifted_ids = jnp.concatenate([input_ids[:, :1], input_ids[:, :-1]], axis=1)
    emb = params["embedding"][shifted_ids]  # (B, S, H), already bf16
    B, S, H = emb.shape
    # TODO(synk): for training-sized M the f32 logits write dominates HBM traffic;
    # switch out_dtype to bf16 or fuse the consumer (softmax/CE) if numerics allow.
    logits = lm_head_pallas(emb.reshape(B * S, H), params["w_out"])
    return logits.reshape(B, S, -1)


if __name__ == "__main__":
    B, S, H, V = 2, 8, 32, 256
    key = jax.random.PRNGKey(0)
    k_emb, k_w, k_ids = jax.random.split(key, 3)

    # Parameters are stored in the bf16 compute dtype ONCE at init — no per-call
    # f32->bf16 cast pass over the H*V weight.
    params = {
        "embedding": (jax.random.normal(k_emb, (V, H), jnp.float32) * 0.02).astype(
            jnp.bfloat16
        ),
        "w_out": (jax.random.normal(k_w, (H, V), jnp.float32) * 0.02).astype(
            jnp.bfloat16
        ),
    }
    input_ids = jax.random.randint(k_ids, (B, S), 0, V, dtype=jnp.int32)
    attention_mask = jnp.ones((B, S), dtype=jnp.int32)

    fwd = jax.jit(shifted_logits_wrapper_forward)
    out = jax.block_until_ready(fwd(input_ids, params, attention_mask))

    # Pure-JAX reference in the module's original order: inner-model logits first
    # (same bf16 compute precision, f32 accumulation), then the wrapper's shift.
    emb_ref = params["embedding"][input_ids]
    logits_ref = jnp.einsum(
        "bsh,hv->bsv", emb_ref, params["w_out"], preferred_element_type=jnp.float32
    )
    ref = jnp.concatenate([logits_ref[:, :1], logits_ref[:, :-1]], axis=1)

    assert out.shape == (B, S, V) and out.dtype == jnp.float32
    assert jnp.allclose(out, ref, atol=1e-5, rtol=1e-4)

    print("KERNEL_OK")
</pallas_src>

<mosaic_0001>
module attributes {stable_mosaic.version = 11 : i64} {
  func.func @_lm_head_kernel(%arg0: i32, %arg1: i32, %arg2: i32, %arg3: memref<16x32xbf16, #tpu.memory_space<vmem>>, %arg4: memref<32x256xbf16, #tpu.memory_space<vmem>>, %arg5: memref<16x256xf32, #tpu.memory_space<vmem>>, %arg6: memref<16x256xf32, #tpu.memory_space<vmem>>) attributes {dimension_semantics = [#tpu.dimension_semantics<parallel>, #tpu.dimension_semantics<arbitrary>, #tpu.dimension_semantics<arbitrary>], iteration_bounds = array<i64: 1, 1, 1>, scalar_prefetch = 0 : i64, scratch_operands = 1 : i64, tpu.core_type = #tpu.core_type<tc>, window_params = [{transform_indices = @transform_0, window_bounds = array<i64: 16, 32>}, {transform_indices = @transform_1, window_bounds = array<i64: 32, 256>}, {transform_indices = @transform_2, window_bounds = array<i64: 16, 256>}]} {
    %c0_i32 = arith.constant 0 : i32
    %0 = arith.cmpi eq, %arg2, %c0_i32 : i32
    %1 = arith.extui %0 : i1 to i32
    %c0_i32_0 = arith.constant 0 : i32
    %2 = arith.cmpi ne, %1, %c0_i32_0 : i32
    scf.if %2 {
      %cst_10 = arith.constant 0.000000e+00 : f32
      %12 = vector.broadcast %cst_10 : f32 to vector<16x256xf32>
      %c0_11 = arith.constant 0 : index
      %c0_12 = arith.constant 0 : index
      %13 = vector.load %arg6[%c0_11, %c0_12] : memref<16x256xf32, #tpu.memory_space<vmem>>, vector<16x256xf32>
      tpu.vector_store %arg6[%c0_11, %c0_12], %12 {strides = array<i32>} : memref<16x256xf32, #tpu.memory_space<vmem>>, vector<16x256xf32>,
    } else {
    }
    %c0 = arith.constant 0 : index
    %c0_1 = arith.constant 0 : index
    %3 = vector.load %arg6[%c0, %c0_1] : memref<16x256xf32, #tpu.memory_space<vmem>>, vector<16x256xf32>
    %c0_2 = arith.constant 0 : index
    %c0_3 = arith.constant 0 : index
    %4 = vector.load %arg3[%c0_2, %c0_3] : memref<16x32xbf16, #tpu.memory_space<vmem>>, vector<16x32xbf16>
    %c0_4 = arith.constant 0 : index
    %c0_5 = arith.constant 0 : index
    %5 = vector.load %arg4[%c0_4, %c0_5] : memref<32x256xbf16, #tpu.memory_space<vmem>>, vector<32x256xbf16>
    %cst = arith.constant dense<0.000000e+00> : vector<16x256xf32>
    %6 = tpu.matmul %4, %5, %cst {dimension_numbers = #tpu.dot_dimension_numbers<[1], [0], [0], [1], [0, 0, 1, 1], [], []>} : vector<16x32xbf16>, vector<32x256xbf16>, vector<16x256xf32> -> vector<16x256xf32>
    %7 = arith.addf %3, %6 : vector<16x256xf32>
    %c0_6 = arith.constant 0 : index
    %c0_7 = arith.constant 0 : index
    %8 = vector.load %arg6[%c0_6, %c0_7] : memref<16x256xf32, #tpu.memory_space<vmem>>, vector<16x256xf32>
    tpu.vector_store %arg6[%c0_6, %c0_7], %7 {strides = array<i32>} : memref<16x256xf32, #tpu.memory_space<vmem>>, vector<16x256xf32>,
    %c0_i32_8 = arith.constant 0 : i32
    %9 = arith.cmpi eq, %arg2, %c0_i32_8 : i32
    %10 = arith.extui %9 : i1 to i32
    %c0_i32_9 = arith.constant 0 : i32
    %11 = arith.cmpi ne, %10, %c0_i32_9 : i32
    scf.if %11 {
      %c0_10 = arith.constant 0 : index
      %c0_11 = arith.constant 0 : index
      %12 = vector.load %arg6[%c0_10, %c0_11] : memref<16x256xf32, #tpu.memory_space<vmem>>, vector<16x256xf32>
      %c0_12 = arith.constant 0 : index
      %c0_13 = arith.constant 0 : index
      %13 = vector.load %arg5[%c0_12, %c0_13] : memref<16x256xf32, #tpu.memory_space<vmem>>, vector<16x256xf32>
      tpu.vector_store %arg5[%c0_12, %c0_13], %12 {strides = array<i32>} : memref<16x256xf32, #tpu.memory_space<vmem>>, vector<16x256xf32>,
    } else {
    }
    return
  }
  func.func @transform_0(%arg0: i32, %arg1: i32, %arg2: i32) -> (i32, i32) {
    %c0_i32 = arith.constant 0 : i32
    return %arg1, %arg2 : i32, i32
  }
  func.func @transform_1(%arg0: i32, %arg1: i32, %arg2: i32) -> (i32, i32) {
    %c0_i32 = arith.constant 0 : i32
    return %arg2, %arg0 : i32, i32
  }
  func.func @transform_2(%arg0: i32, %arg1: i32, %arg2: i32) -> (i32, i32) {
    %c0_i32 = arith.constant 0 : i32
    return %arg1, %arg0 : i32, i32
  }
}

</mosaic_0001>

<bundles_post_ra>
// kernel: shifted_logits_wrapper_forward.1
= control target key start
LH: loop header
LB: loop body
LE: loop exit
PB: predicated region body
PF: predicated region fallthrough
CT: control target
= control target key end

     0   :  { %v179_v2 = vmov 0   ;;  %s225_s0 = inlined_call_operand.vmem [shape: bf16[16,32], index: 0, kind: input, shape index: {}]   ;;  %s226_s1 = inlined_call_operand.vmem [shape: bf16[32,256], index: 1, kind: input, shape index: {}]   ;;  %s227_s2 = inlined_call_operand.hbm [shape: f32[16,256], index: 2, kind: output, shape index: {}]  }
   0x1   :  { %v148_v0 = vld [vmem:[%s226_s1 + $0x4] ss:$8 sps:$4 sm:$0xff]   ;;  %v150_v1 = vld [vmem:[%s226_s1] ss:$8 sps:$4 sm:$0xff]   ;;  %92 = vmatprep.mubr.bf16.mxu0 %v179_v2  ;;  %v151_v3 = vld [vmem:[%s226_s1 + $0x14] ss:$8 sps:$4 sm:$0xff]  }
   0x2   :  { %60 = vmatprep.subr.bf16.mxu0 %v148_v0  ;;  %v153_v4 = vld [vmem:[%s226_s1 + $0x10] ss:$8 sps:$4 sm:$0xff]  }
   0x3   :  { %61 = vmatpush1.bf16.msra.mxu0 %v150_v1 }
   0x4   :  { %7 = vsyncpa [#allocation4], 0  ;;  %62 = vmatprep.subr.bf16.mxu0 %v151_v3  ;;  %v154_v5 = vld [vmem:[%s225_s0] sm:$0xff]   ;;  %vm56_vm0 = vcmask 261120   ;;  %s180_s19 = smov [#allocation3]  }
   0x5   :  { %s127_s20 = sshll.u32 %s180_s19, 4  ;;  %s128_s20 = int_to_ptr.vmem [resolvable:$true] %s127_s20 }
   0x6   :  { %s155_s1 = scalar_lea.vmem %s128_s20, 512  ;;  %p160_p1 = scmp.lt.s32.totalorder %s128_s20, %s128_s20 }
   0x7   :  { %63 = vmatpush1.bf16.msra.mxu0 %v153_v4  ;;  %p156_p0 = scmp.ne.s32.totalorder %s128_s20, %s155_s1  ;;  %p161_p2 = scmp.lt.s32.totalorder %s155_s1, %s155_s1 }
   0x9   :  { %p162_p3 = por %p161_p2, %p160_p1 }
   0xa   :  { %143 = vmatmul.mubr.msk.bf16.vlgmr.msra.gmra.mrb[0].mxu0 %vm56_vm0, %v154_v5 }
   0xb   :  { %p163_p4 = pnand %p162_p3, %p156_p0 }
  0xdd   :  { %v94_v6 = vpop.f32.mrb[0].mxu0 }
  0xde   :  { %118 = vst [vmem:[#allocation3] sm:$0xff] %v94_v6  ;;  %v96_v7 = vpop.f32.mrb[1].mxu0 }
  0xdf   :  { %119 = vst [vmem:[#allocation3 + $0x8] sm:$0xff] %v96_v7  ;;  %v98_v8 = vpop.f32.mrb[2].mxu0 }
  0xe0   :  { %120 = vst [vmem:[#allocation3 + $0x10] sm:$0xff] %v98_v8  ;;  %v100_v9 = vpop.f32.mrb[3].mxu0 }
  0xe1   :  { %121 = vst [vmem:[#allocation3 + $0x18] sm:$0xff] %v100_v9 }
  0xe2   :  { %166 = shalt.err (!%p163_p4)
}
  0xe3   :  { %s167_s22 = scalar_lea.hbm %s227_s2, 512 }
  0xe4   :  { %p168_p5 = scmp.ne.s32.totalorder %s227_s2, %s167_s22  ;;  %p171_p6 = scmp.lt.u32.totalorder %s167_s22, %s227_s2 }
  0xe6   :  { %p173_p7 = pnand %p171_p6, %p168_p5 }
  0xe8   :  { %176 = shalt.err (!%p173_p7)
}
  0xe9   :  { %s181_s27 = smov 256   ;;  %s182_s28 = smov 16  }
  0xea   :  { %133 = dma.vmem_to_hbm [thread:$0]  %s128_s20, 512, %s227_s2, [#allocation4], %s181_s27, %s181_s27, %s182_s28  }
  0xeb   :  { %177 = dma.done.wait [#allocation4], 512  }
  0xec   :  { %178 = vsyncadd [#allocation4], 4294966784 }
  0xed   :  { %137 = vsyncpa [#allocation4], 1 }

</bundles_post_ra>
